<compile_context>
chip_gen: v5e
topology: v5e:2x2
jax: 0.10.0
libtpu: 0.0.40
codegen_flags: <defaults>
</compile_context>

<pallas_src>
from functools import partial

import jax
import jax.numpy as jnp
from jax import lax
from jax.experimental import pallas as pl
from jax.experimental.pallas import tpu as pltpu

VOCAB = 16     # vocab_size
EMB = 8        # embedding_dim
HIDDEN = 32    # hidden_size
LANE = 128     # TPU lane width; fc outputs are padded to this for lane-dense stores


def _rnn_qaoa_kernel(beta_ref, tok_ref, emb_ref, wih_ref, whh_ref, bh_ref,
                     wfc_ref, bfc_ref, out_ref, *, vocab_size):
    T, S = tok_ref.shape
    vp1 = emb_ref.shape[0]          # sublane-padded (vocab_size + 1)
    R, VPAD = out_ref.shape

    # Fused embedding gather, restricted to the single batch row (S-1) that
    # out[:, -1, :] ever consumes: one-hot(tok[t, S-1]) @ emb_table.
    iota_tok = lax.broadcasted_iota(jnp.int32, (1, vp1), 1)
    onehot_rows = [(iota_tok == tok_ref[t, S - 1]).astype(jnp.float32)
                   for t in range(T)]
    onehot = onehot_rows[0] if T == 1 else jnp.concatenate(onehot_rows, axis=0)   # (T, vp1)
    x_emb = jnp.dot(onehot, emb_ref[...], preferred_element_type=jnp.float32)     # (T, E)

    # Input projection + bias hoisted off the serial recurrence chain
    # (no dependence on h, one MXU push for all time steps).
    x_proj = (jnp.dot(x_emb, wih_ref[...], preferred_element_type=jnp.float32)
              + bh_ref[...])                                                      # (T, H)

    # Serial tanh recurrence, fully unrolled (T static & tiny). h0 == 0, so the
    # first step needs no h @ W_hh matmul at all.
    whh = whh_ref[...]
    h = jnp.tanh(x_proj[0:1, :])
    hs = [h]
    for t in range(1, T):
        h = jnp.tanh(x_proj[t:t + 1, :]
                     + jnp.dot(h, whh, preferred_element_type=jnp.float32))
        hs.append(h)
    last = hs[0] if T == 1 else jnp.concatenate(hs, axis=0)    # == out[:, -1, :]  (T, H)

    # Final linear layer; weights are lane-padded to VPAD so stores are lane-dense.
    logits = (jnp.dot(last, wfc_ref[...], preferred_element_type=jnp.float32)
              + bfc_ref[...])                                                      # (T, VPAD)

    # softmax(-beta * logits, dim=1)[0], with padded lanes masked out.
    beta = beta_ref[0, 0]
    iota_lane = lax.broadcasted_iota(jnp.int32, (1, VPAD), 1)
    z = jnp.where(iota_lane < vocab_size, -beta * logits[0:1, :], -jnp.inf)
    z = z - jnp.max(z, axis=-1, keepdims=True)
    e = jnp.exp(z)
    probs = e * pl.reciprocal(jnp.sum(e, axis=-1, keepdims=True), approx=True)

    # Single lane-dense (R, VPAD) output slab: rows [0, T) = logits, row T = probs.
    out_ref[...] = jnp.zeros((R, VPAD), jnp.float32)
    out_ref[0:T, :] = logits
    out_ref[T:T + 1, :] = probs


def rnn_qaoa_pallas(tokens, beta_temp, params, vocab_size=VOCAB):
    emb_table, w_ih, w_hh, b_h, w_fc_pad, b_fc_pad = params
    T, S = tokens.shape
    VPAD = w_fc_pad.shape[1]
    R = pl.cdiv(T + 1, 8) * 8          # logits rows + probs row, sublane-aligned

    beta = jnp.asarray(beta_temp, jnp.float32).reshape(1, 1)   # scalar -> SMEM
    tokens = tokens.astype(jnp.int32)                          # token ids -> SMEM

    vmem = pl.BlockSpec(memory_space=pltpu.MemorySpace.VMEM)
    smem = pl.BlockSpec(memory_space=pltpu.MemorySpace.SMEM)

    slab = pl.pallas_call(
        partial(_rnn_qaoa_kernel, vocab_size=vocab_size),
        out_shape=jax.ShapeDtypeStruct((R, VPAD), jnp.float32),
        in_specs=[smem, smem, vmem, vmem, vmem, vmem, vmem, vmem],
        out_specs=vmem,
    )(beta, tokens, emb_table, w_ih, w_hh, b_h, w_fc_pad, b_fc_pad)

    pred_logits = slab[:T, :vocab_size]          # (T, V)
    pred_probabilities = slab[T, :vocab_size]    # (V,) == softmax(-beta*logits, 1)[0]
    return pred_logits, pred_probabilities


def forward(tokens, beta_temp, params, sample_key):
    """Mirrors RNN_QAOA.forward: returns (pred_logits[0][idx], (idx + 1).view(1, 1))."""
    logits, probs = rnn_qaoa_pallas(tokens, beta_temp, params)
    # TODO(synk): torch.multinomial is stochastic sampling (not a hot-path op);
    # reproduced here in plain JAX via inverse-CDF with a deterministic key.
    u = jax.random.uniform(sample_key, ())
    cdf = jnp.cumsum(probs)
    sample_index = jnp.minimum(jnp.searchsorted(cdf, u), probs.shape[0] - 1).reshape(1)
    val = logits[0][sample_index]                                     # shape (1,)
    next_token = (sample_index + 1).reshape(1, 1).astype(jnp.int32)   # shape (1, 1)
    return val, next_token


def init_params(key, vocab_size=VOCAB, embedding_dim=EMB, hidden_size=HIDDEN):
    """Deterministic synthetic parameters matching the PyTorch module's shapes
    (transposed [in, out] weights; emb rows sublane-padded; fc lane-padded)."""
    k1, k2, k3, k4, k5, k6, k7 = jax.random.split(key, 7)
    s = 1.0 / jnp.sqrt(jnp.float32(hidden_size))
    vp1 = vocab_size + 1
    vp1_pad = pl.cdiv(vp1, 8) * 8

    emb_table = jax.random.normal(k1, (vp1, embedding_dim), jnp.float32)
    emb_table = jnp.pad(emb_table, ((0, vp1_pad - vp1), (0, 0)))       # sublane pad
    w_ih = jax.random.uniform(k2, (embedding_dim, hidden_size), jnp.float32, -s, s)
    w_hh = jax.random.uniform(k3, (hidden_size, hidden_size), jnp.float32, -s, s)
    b_ih = jax.random.uniform(k4, (1, hidden_size), jnp.float32, -s, s)
    b_hh = jax.random.uniform(k5, (1, hidden_size), jnp.float32, -s, s)
    w_fc = jax.random.uniform(k6, (hidden_size, vocab_size), jnp.float32, -s, s)
    b_fc = jax.random.uniform(k7, (1, vocab_size), jnp.float32, -s, s)
    # Lane-pad the fc weights/bias so the kernel's output stores are lane-dense.
    w_fc_pad = jnp.pad(w_fc, ((0, 0), (0, LANE - vocab_size)))
    b_fc_pad = jnp.pad(b_fc, ((0, 0), (0, LANE - vocab_size)))
    return emb_table, w_ih, w_hh, b_ih + b_hh, w_fc_pad, b_fc_pad


if __name__ == "__main__":
    key = jax.random.PRNGKey(0)
    pkey, tkey, skey = jax.random.split(key, 3)
    params = init_params(pkey)

    # token tensor: [T=2, S=8], values in [0, vocab_size] (embedding has vocab_size+1 rows)
    tokens = jax.random.randint(tkey, (2, 8), 0, VOCAB + 1, dtype=jnp.int32)
    beta_temp = jnp.float32(1.5)

    fwd = jax.jit(forward)
    val, next_token = fwd(tokens, beta_temp, params, skey)
    jax.block_until_ready((val, next_token))
    assert val.shape == (1,)
    assert next_token.shape == (1, 1)
    print("KERNEL_OK")
</pallas_src>

<mosaic_0001>
module attributes {stable_mosaic.version = 11 : i64} {
  func.func @_rnn_qaoa_kernel(%arg0: memref<1x1xf32, #tpu.memory_space<smem>>, %arg1: memref<2x8xi32, #tpu.memory_space<smem>>, %arg2: memref<24x8xf32, #tpu.memory_space<vmem>>, %arg3: memref<8x32xf32, #tpu.memory_space<vmem>>, %arg4: memref<32x32xf32, #tpu.memory_space<vmem>>, %arg5: memref<1x32xf32, #tpu.memory_space<vmem>>, %arg6: memref<32x128xf32, #tpu.memory_space<vmem>>, %arg7: memref<1x128xf32, #tpu.memory_space<vmem>>, %arg8: memref<8x128xf32, #tpu.memory_space<vmem>>) attributes {dimension_semantics = [], scalar_prefetch = 0 : i64, scratch_operands = 0 : i64, tpu.core_type = #tpu.core_type<tc>} {
    %0 = tpu.iota {dimensions = array<i32: 1>} : vector<1x24xi32>
    %c0 = arith.constant 0 : index
    %c7 = arith.constant 7 : index
    %1 = memref.load %arg1[%c0, %c7] : memref<2x8xi32, #tpu.memory_space<smem>>
    %2 = vector.broadcast %1 : i32 to vector<1x24xi32>
    %3 = arith.cmpi eq, %0, %2 : vector<1x24xi32>
    %4 = arith.extui %3 : vector<1x24xi1> to vector<1x24xi32>
    %5 = arith.sitofp %4 : vector<1x24xi32> to vector<1x24xf32>
    %c1 = arith.constant 1 : index
    %c7_0 = arith.constant 7 : index
    %6 = memref.load %arg1[%c1, %c7_0] : memref<2x8xi32, #tpu.memory_space<smem>>
    %7 = vector.broadcast %6 : i32 to vector<1x24xi32>
    %8 = arith.cmpi eq, %0, %7 : vector<1x24xi32>
    %9 = arith.extui %8 : vector<1x24xi1> to vector<1x24xi32>
    %10 = arith.sitofp %9 : vector<1x24xi32> to vector<1x24xf32>
    %11 = tpu.concatenate %5, %10 in 0 : vector<1x24xf32>, vector<1x24xf32> -> vector<2x24xf32>
    %c0_1 = arith.constant 0 : index
    %c0_2 = arith.constant 0 : index
    %12 = vector.load %arg2[%c0_1, %c0_2] : memref<24x8xf32, #tpu.memory_space<vmem>>, vector<24x8xf32>
    %cst = arith.constant dense<0.000000e+00> : vector<2x8xf32>
    %13 = tpu.matmul %11, %12, %cst {dimension_numbers = #tpu.dot_dimension_numbers<[1], [0], [0], [1], [0, 0, 1, 1], [], []>} : vector<2x24xf32>, vector<24x8xf32>, vector<2x8xf32> -> vector<2x8xf32>
    %c0_3 = arith.constant 0 : index
    %c0_4 = arith.constant 0 : index
    %14 = vector.load %arg3[%c0_3, %c0_4] : memref<8x32xf32, #tpu.memory_space<vmem>>, vector<8x32xf32>
    %cst_5 = arith.constant dense<0.000000e+00> : vector<2x32xf32>
    %15 = tpu.matmul %13, %14, %cst_5 {dimension_numbers = #tpu.dot_dimension_numbers<[1], [0], [0], [1], [0, 0, 1, 1], [], []>} : vector<2x8xf32>, vector<8x32xf32>, vector<2x32xf32> -> vector<2x32xf32>
    %c0_6 = arith.constant 0 : index
    %c0_7 = arith.constant 0 : index
    %16 = vector.load %arg5[%c0_6, %c0_7] : memref<1x32xf32, #tpu.memory_space<vmem>>, vector<1x32xf32>
    %17 = vector.broadcast %16 : vector<1x32xf32> to vector<2x32xf32>
    %18 = arith.addf %15, %17 : vector<2x32xf32>
    %c0_8 = arith.constant 0 : index
    %c0_9 = arith.constant 0 : index
    %19 = vector.load %arg4[%c0_8, %c0_9] : memref<32x32xf32, #tpu.memory_space<vmem>>, vector<32x32xf32>
    %20 = vector.extract_strided_slice %18 {offsets = [0, 0], sizes = [1, 32], strides = [1, 1]} : vector<2x32xf32> to vector<1x32xf32>
    %21 = math.tanh %20 : vector<1x32xf32>
    %22 = vector.extract_strided_slice %18 {offsets = [1, 0], sizes = [1, 32], strides = [1, 1]} : vector<2x32xf32> to vector<1x32xf32>
    %cst_10 = arith.constant dense<0.000000e+00> : vector<1x32xf32>
    %23 = tpu.matmul %21, %19, %cst_10 {dimension_numbers = #tpu.dot_dimension_numbers<[1], [0], [0], [1], [0, 0, 1, 1], [], []>} : vector<1x32xf32>, vector<32x32xf32>, vector<1x32xf32> -> vector<1x32xf32>
    %24 = arith.addf %22, %23 : vector<1x32xf32>
    %25 = math.tanh %24 : vector<1x32xf32>
    %26 = tpu.concatenate %21, %25 in 0 : vector<1x32xf32>, vector<1x32xf32> -> vector<2x32xf32>
    %c0_11 = arith.constant 0 : index
    %c0_12 = arith.constant 0 : index
    %27 = vector.load %arg6[%c0_11, %c0_12] : memref<32x128xf32, #tpu.memory_space<vmem>>, vector<32x128xf32>
    %cst_13 = arith.constant dense<0.000000e+00> : vector<2x128xf32>
    %28 = tpu.matmul %26, %27, %cst_13 {dimension_numbers = #tpu.dot_dimension_numbers<[1], [0], [0], [1], [0, 0, 1, 1], [], []>} : vector<2x32xf32>, vector<32x128xf32>, vector<2x128xf32> -> vector<2x128xf32>
    %c0_14 = arith.constant 0 : index
    %c0_15 = arith.constant 0 : index
    %29 = vector.load %arg7[%c0_14, %c0_15] : memref<1x128xf32, #tpu.memory_space<vmem>>, vector<1x128xf32>
    %30 = vector.broadcast %29 : vector<1x128xf32> to vector<2x128xf32>
    %31 = arith.addf %28, %30 : vector<2x128xf32>
    %c0_16 = arith.constant 0 : index
    %c0_17 = arith.constant 0 : index
    %32 = memref.load %arg0[%c0_16, %c0_17] : memref<1x1xf32, #tpu.memory_space<smem>>
    %33 = tpu.iota {dimensions = array<i32: 1>} : vector<1x128xi32>
    %c16_i32 = arith.constant 16 : i32
    %34 = vector.broadcast %c16_i32 : i32 to vector<1x128xi32>
    %35 = arith.cmpi slt, %33, %34 : vector<1x128xi32>
    %cst_18 = arith.constant 0.000000e+00 : f32
    %36 = arith.subf %cst_18, %32 : f32
    %37 = vector.extract_strided_slice %31 {offsets = [0, 0], sizes = [1, 128], strides = [1, 1]} : vector<2x128xf32> to vector<1x128xf32>
    %38 = vector.broadcast %36 : f32 to vector<1x128xf32>
    %39 = arith.mulf %38, %37 : vector<1x128xf32>
    %cst_19 = arith.constant 0xFF800000 : f32
    %40 = vector.broadcast %cst_19 : f32 to vector<1x128xf32>
    %41 = arith.select %35, %39, %40 : vector<1x128xi1>, vector<1x128xf32>
    %cst_20 = arith.constant dense<0xFF800000> : vector<1xf32>
    %42 = vector.multi_reduction <maximumf>, %41, %cst_20 [1] : vector<1x128xf32> to vector<1xf32>
    %43 = vector.shape_cast %42 : vector<1xf32> to vector<1x1xf32>
    %44 = vector.broadcast %43 : vector<1x1xf32> to vector<1x128xf32>
    %45 = arith.subf %41, %44 : vector<1x128xf32>
    %46 = math.exp %45 : vector<1x128xf32>
    %cst_21 = arith.constant dense<0.000000e+00> : vector<1xf32>
    %47 = vector.multi_reduction <add>, %46, %cst_21 [1] : vector<1x128xf32> to vector<1xf32>
    %48 = vector.shape_cast %47 : vector<1xf32> to vector<1x1xf32>
    %49 = tpu.reciprocal %48 {approx = true} : vector<1x1xf32> -> vector<1x1xf32>
    %50 = vector.broadcast %49 : vector<1x1xf32> to vector<1x128xf32>
    %51 = arith.mulf %46, %50 : vector<1x128xf32>
    %cst_22 = arith.constant 0.000000e+00 : f32
    %52 = vector.broadcast %cst_22 : f32 to vector<8x128xf32>
    %c0_23 = arith.constant 0 : index
    %c0_24 = arith.constant 0 : index
    %53 = vector.load %arg8[%c0_23, %c0_24] : memref<8x128xf32, #tpu.memory_space<vmem>>, vector<8x128xf32>
    tpu.vector_store %arg8[%c0_23, %c0_24], %52 {strides = array<i32>} : memref<8x128xf32, #tpu.memory_space<vmem>>, vector<8x128xf32>,
    %c0_25 = arith.constant 0 : index
    %c0_26 = arith.constant 0 : index
    %54 = vector.load %arg8[%c0_25, %c0_26] : memref<8x128xf32, #tpu.memory_space<vmem>>, vector<2x128xf32>
    tpu.vector_store %arg8[%c0_25, %c0_26], %31 {strides = array<i32>} : memref<8x128xf32, #tpu.memory_space<vmem>>, vector<2x128xf32>,
    %c2 = arith.constant 2 : index
    %c0_27 = arith.constant 0 : index
    %55 = vector.load %arg8[%c2, %c0_27] : memref<8x128xf32, #tpu.memory_space<vmem>>, vector<1x128xf32>
    tpu.vector_store %arg8[%c2, %c0_27], %51 {strides = array<i32>} : memref<8x128xf32, #tpu.memory_space<vmem>>, vector<1x128xf32>,
    return
  }
}

</mosaic_0001>

<bundles_post_ra>
// kernel: forward.1
= control target key start
LH: loop header
LB: loop body
LE: loop exit
PB: predicated region body
PF: predicated region fallthrough
CT: control target
= control target key end

     0   :  { %14 = vsyncpa [#allocation4], 0  ;;  %s238_s30 = smov [#allocation3]   ;;  %s348_s0 = inlined_call_operand.<no memory space> [shape: f32[1,1], index: 0, kind: input, shape index: {}]   ;;  %s349_s1 = inlined_call_operand.vmem [shape: s32[2,8], index: 1, kind: input, shape index: {}]   ;;  %s350_s2 = inlined_call_operand.vmem [shape: f32[24,8], index: 2, kind: input, shape index: {}]   ;;  %s351_s3 = inlined_call_operand.vmem [shape: f32[8,32], index: 3, kind: input, shape index: {}]   ;;  %s352_s4 = inlined_call_operand.vmem [shape: f32[32,32], index: 4, kind: input, shape index: {}]   ;;  %s353_s5 = inlined_call_operand.vmem [shape: f32[1,32], index: 5, kind: input, shape index: {}]   ;;  %s354_s6 = inlined_call_operand.vmem [shape: f32[32,128], index: 6, kind: input, shape index: {}]   ;;  %s355_s7 = inlined_call_operand.vmem [shape: f32[1,128], index: 7, kind: input, shape index: {}]   ;;  %s356_s8 = inlined_call_operand.vmem [shape: f32[8,128], index: 8, kind: output, shape index: {}]  }
   0x1   :  { %s22_s29 = sshll.u32 %s349_s1, 4  ;;  %s23_s29 = int_to_ptr.vmem [resolvable:$true] %s22_s29 }
   0x2   :  { %25 = dma.vmem_to_smem %s23_s29, 32, %s238_s30, [#allocation4]  }
   0x3   :  { %236 = dma.done.wait [#allocation4], 32  }
   0x4   :  { %237 = vsyncadd [#allocation4], 4294967264 }
   0x5   :  { %42 = sfence }
   0x6   :  { %v59_v0 = vld [vmem:[%s350_s2 + $0x10] sm:$0xff]  ;;  %v58_v1 = vld [vmem:[%s350_s2 + $0x8] sm:$0xff]  ;;  %v43_v2 = vlaneseq  ;;  %s204_s13 = sld [smem:[#allocation3 + $0x7]]  ;;  %v239_v3 = vmov 0.0   ;;  %v57_v4 = vld [vmem:[%s350_s2] sm:$0xff]  ;;  %vm55_vm1 = vcmask 1040384  }
   0x7   :  { %77 = vmatpush.msra.mxu0 %v59_v0  ;;  %s206_s14 = sld [smem:[#allocation3 + $0x87]]  ;;  %196 = vst [vmem:[%s356_s8] sm:$0xff] %v239_v3  ;;  %vm60_vm3 = vcmask 195584   ;;  %v84_v11 = vld [vmem:[%s351_s3] sm:$0xff]  ;;  %vm89_vm4 = vcmask 64512   ;;  %v116_v13 = vld [vmem:[%s352_s4 + $0x18] sm:$0xff]  ;;  %v115_v14 = vld [vmem:[%s352_s4 + $0x10] sm:$0xff] }
   0x8   :  { %v44_v5 = vand.u32 127, %v43_v2  ;;  %108 = vmatpush.msra.mxu1 %v84_v11  ;;  %134 = vmatpush.msra.mxu2 %v116_v13  ;;  %v114_v15 = vld [vmem:[%s352_s4 + $0x8] sm:$0xff]  ;;  %v113_v16 = vld [vmem:[%s352_s4] sm:$0xff]  ;;  %vm118_vm5 = vcmask 261120   ;;  %v151_v21 = vld [vmem:[%s354_s6 + $0x18] sm:$0xff] }
   0x9   :  { %78 = vmatpush.msra.mxu0 %v58_v1  ;;  %v214_v17 = vld [vmem:[%s353_s5] ss:$0 sm:$0xff]  ;;  %v150_v22 = vld [vmem:[%s354_s6 + $0x10] sm:$0xff]  ;;  %171 = vmatpush.msra.mxu3 %v151_v21  ;;  %v149_v23 = vld [vmem:[%s354_s6 + $0x8] sm:$0xff] }
   0xa   :  { %135 = vmatpush.msra.mxu2 %v115_v14  ;;  %v148_v24 = vld [vmem:[%s354_s6] sm:$0xff]  ;;  %vm180_vm6 = vcmp.lt.s32.totalorder %v44_v5, 16 }
   0xb   :  { %79 = vmatpush.msra.mxu0 %v57_v4  ;;  %172 = vmatpush.msra.mxu3 %v150_v22  ;;  %v215_v30 = vld [vmem:[%s355_s7] ss:$0 sm:$0xff] }
   0xc   :  { %v46_v6 = vstv %s204_s13  ;;  %136 = vmatpush.msra.mxu2 %v114_v15 }
   0xd   :  { %vm47_vm0 = vcmp.eq.s32.totalorder %v44_v5, %v46_v6  ;;  %v51_v7 = vstv %s206_s14  ;;  %173 = vmatpush.msra.mxu3 %v149_v23  ;;  %s181_s14 = ssub.f32 0.0, %s348_s0 }
   0xe   :  { %v205_v8 = vsel %vm47_vm0, 1.0, %v239_v3  ;;  %vm52_vm2 = vcmp.eq.s32.totalorder %v44_v5, %v51_v7  ;;  %137 = vmatpush.msra.mxu2 %v113_v16 }
   0xf   :  { %v207_v9 = vsel %vm52_vm2, 1.0, %v239_v3  ;;  %174 = vmatpush.msra.mxu3 %v148_v24  ;;  %v182_v32 = vstv %s181_s14 }
  0x10   :  { %v56_v10 = vsel %vm55_vm1, %v205_v8, %v207_v9 }
  0x11   :  { %208 = vmatmul.msk.f32.vlgmr.msra.gmra.mxu0 %vm60_vm3, %v56_v10 }
  0x8e   :  { %v81_v12 = vpop.f32.mrf.mxu0 }
  0x8f   :  { %209 = vmatmul.msk.f32.vlgmr.msra.gmra.mxu1 %vm89_vm4, %v81_v12 }
 0x10c   :  { %v110_v18 = vpop.f32.mrf.mxu1 }
 0x10d   :  { %v111_v19 = vadd.f32 %v214_v17, %v110_v18 }
 0x10f   :  { %216 = vtanh.f32 %v111_v19 }
 0x115   :  { %v217_v20 = vpop.eup %216 }
 0x116   :  { %210 = vmatmul.msk.f32.vlgmr.msra.gmra.mxu2 %vm118_vm5, %v217_v20 }
 0x199   :  { %v139_v25 = vpop.f32.mrf.mxu2 }
 0x19a   :  { %v143_v26 = vrot.slane %v139_v25, 7 }
 0x19c   :  { %v145_v27 = vadd.f32 %v143_v26, %v111_v19 }
 0x19e   :  { %218 = vtanh.f32 %v145_v27 }
 0x1a4   :  { %v219_v28 = vpop.eup %218 }
 0x1a5   :  { %v147_v29 = vsel %vm55_vm1, %v217_v20, %v219_v28 }
 0x1a6   :  { %211 = vmatmul.msk.f32.vlgmr.msra.gmra.mxu3 %vm118_vm5, %v147_v29 }
 0x229   :  { %v176_v31 = vpop.f32.mrf.mxu3 }
 0x22a   :  { %v177_v33 = vadd.f32 %v215_v30, %v176_v31 }
 0x22c   :  { %v183_v34 = vmul.f32 %v182_v32, %v177_v33  ;;  %197 = vst [vmem:[%s356_s8] sm:$0x3] %v177_v33 }
 0x22e   :  { %v184_v35 = vsel %vm180_vm6, %v183_v34, -inf }
 0x22f   :  { %v185_v36 = vsel %vm55_vm1, %v184_v35, -inf }
 0x230   :  { %186 = vmax.xlane.f32.xlu0 %v185_v36 }
 0x2a3   :  { %v187_v37 = vpop.xlane.xlu0 %186 }
 0x2a4   :  { %v188_v38 = vsub.f32 %v184_v35, %v187_v37 }
 0x2a6   :  { %v189_v39 = vmul.f32 1.442695, %v188_v38 }
 0x2a8   :  { %220 = vpow2.f32 %v189_v39 }
 0x2ae   :  { %v221_v40 = vpop.eup %220 }
 0x2af   :  { %v191_v41 = vsel %vm55_vm1, %v221_v40, 0.0 }
 0x2b0   :  { %192 = vadd.xlane.f32.xlu0 %v191_v41 }
 0x323   :  { %v193_v42 = vpop.xlane.xlu0 %192 }
 0x324   :  { %222 = vrcp.f32 %v193_v42 }
 0x32a   :  { %v223_v43 = vpop.eup %222 }
 0x32b   :  { %v195_v44 = vmul.f32 %v223_v43, %v221_v40 }
 0x32d   :  { %198 = vst [vmem:[%s356_s8 + $0x2] sm:$0x1] %v195_v44 }
 0x32e   :  { %203 = vsyncpa [#allocation4], 1 }

</bundles_post_ra>
